<compile_context>
chip_gen: v6e
topology: v6e:2x2x1
jax: 0.10.0
libtpu: 0.0.40
codegen_flags: <defaults>
</compile_context>

<pallas_src>
import functools
import math

import jax
import jax.numpy as jnp
from jax import lax
from jax.experimental import pallas as pl
from jax.experimental.pallas import tpu as pltpu

DROPOUT_P = 0.1          # nn.Dropout(0.1), training-mode (inverted-dropout) semantics
LN_EPS = 1e-5            # nn.LayerNorm default eps

# pl.reciprocal(approx=True) maps to the EUP vrcp slot on TPU; use the exact
# path when running through the CPU interpreter.
_APPROX_RECIP = jax.default_backend() == "tpu"


def _residual1_kernel(q_ref, k_ref, v_ref, bits_ref, gamma_ref, beta_ref,
                      out_ref, attn_ref, *, scale, keep_threshold, keep_scale):
    q = q_ref[...]                                   # (Bt, S, D), native dtype
    k = k_ref[...]
    v = v_ref[...]

    # ---- sublayer: scaled dot-product attention (batched over Bt) ----
    # Contract feature dims directly (no explicit k.T transpose through the
    # XLU); MXU accumulates in f32 regardless of operand dtype.
    scores = lax.dot_general(
        q, k, dimension_numbers=(((2,), (2,)), ((0,), (0,))),
        preferred_element_type=jnp.float32) * scale                  # (Bt, S, S)

    m = jnp.max(scores, axis=-1, keepdims=True)
    e = jnp.exp(scores - m)
    denom = jnp.sum(e, axis=-1, keepdims=True)
    attn = e * pl.reciprocal(denom, approx=_APPROX_RECIP)            # (Bt, S, S) f32

    # Second matmul consumes probabilities in the value dtype (full bf16 MXU
    # rate when v is bf16), f32 accumulation.
    p = attn.astype(v.dtype)
    sub_out = lax.dot_general(
        p, v, dimension_numbers=(((2,), (1,)), ((0,), (0,))),
        preferred_element_type=jnp.float32)                          # (Bt, S, D) f32

    # ---- dropout (training semantics): integer-threshold compare ----
    keep = bits_ref[...] >= jnp.uint32(keep_threshold)
    sub_out = jnp.where(keep, sub_out * keep_scale, 0.0)

    # ---- residual add + LayerNorm over last dim (f32 math) ----
    x = q.astype(jnp.float32) + sub_out
    mean = jnp.mean(x, axis=-1, keepdims=True)
    xc = x - mean
    var = jnp.mean(xc * xc, axis=-1, keepdims=True)
    inv = lax.rsqrt(var + LN_EPS)
    y = (xc * inv * gamma_ref[...].astype(jnp.float32)
         + beta_ref[...].astype(jnp.float32))                        # (Bt, S, D)

    out_ref[...] = y.astype(out_ref.dtype)
    attn_ref[...] = attn.astype(attn_ref.dtype)


def _pick_batch_tile(B, S, D, itemsize, budget_bytes):
    """Largest divisor of B whose per-step VMEM footprint fits the budget."""
    per_row = (
        2 * 3 * S * D * itemsize    # q, k, v (double-buffered)
        + 2 * S * D * 4             # dropout bits (double-buffered)
        + 2 * S * D * itemsize      # normed output (double-buffered)
        + 2 * S * S * 4             # attn-weights output (double-buffered)
        + 4 * S * S * 4             # f32 score / exp / prob temporaries
        + 3 * S * D * 4             # f32 sub_out / residual temporaries
    )
    bt = max(1, min(B, budget_bytes // max(per_row, 1)))
    while B % bt:
        bt -= 1
    return bt


def residual1_forward(query, key, value, gamma, beta, *, rng_key=None,
                      training=True):
    """Returns (LayerNorm(query + dropout(attn_out)), attention_weights)."""
    B, S, D = query.shape
    gamma2 = gamma.reshape(1, D)
    beta2 = beta.reshape(1, D)

    if training and DROPOUT_P > 0.0:
        if rng_key is None:
            rng_key = jax.random.PRNGKey(0)
        bits = jax.random.bits(rng_key, (B, S, D), dtype=jnp.uint32)
        keep_threshold = int(round(DROPOUT_P * 2.0**32))   # drop iff bits < thr
        keep_scale = 1.0 / (1.0 - DROPOUT_P)
    else:
        bits = jnp.zeros((B, S, D), dtype=jnp.uint32)
        keep_threshold = 0
        keep_scale = 1.0

    # Several batch rows per grid step; budget well under the 32 MiB scoped
    # default (and v7x's 64 MiB physical VMEM).
    Bt = _pick_batch_tile(B, S, D, query.dtype.itemsize,
                          budget_bytes=24 * 1024 * 1024)

    kernel = functools.partial(
        _residual1_kernel,
        scale=1.0 / math.sqrt(D),
        keep_threshold=keep_threshold,
        keep_scale=keep_scale,
    )

    grid_spec = pltpu.PrefetchScalarGridSpec(
        num_scalar_prefetch=0,
        grid=(B // Bt,),
        in_specs=[
            pl.BlockSpec((Bt, S, D), lambda b: (b, 0, 0)),   # query
            pl.BlockSpec((Bt, S, D), lambda b: (b, 0, 0)),   # key
            pl.BlockSpec((Bt, S, D), lambda b: (b, 0, 0)),   # value
            pl.BlockSpec((Bt, S, D), lambda b: (b, 0, 0)),   # dropout bits
            pl.BlockSpec((1, D), lambda b: (0, 0)),          # LN gamma
            pl.BlockSpec((1, D), lambda b: (0, 0)),          # LN beta
        ],
        out_specs=[
            pl.BlockSpec((Bt, S, D), lambda b: (b, 0, 0)),   # normed output
            pl.BlockSpec((Bt, S, S), lambda b: (b, 0, 0)),   # attention weights
        ],
    )

    out_shapes = (
        jax.ShapeDtypeStruct((B, S, D), query.dtype),
        jax.ShapeDtypeStruct((B, S, S), jnp.float32),
    )

    return pl.pallas_call(
        kernel,
        grid_spec=grid_spec,
        out_shape=out_shapes,
        compiler_params=pltpu.CompilerParams(
            dimension_semantics=("parallel",),          # batches independent (v7x 2 TCs)
            vmem_limit_bytes=48 * 1024 * 1024,
        ),
    )(query, key, value, bits, gamma2, beta2)


def _reference(query, key, value, gamma, beta, bits, keep_threshold, keep_scale):
    """Pure-JAX reference with identical dropout mask, for validation."""
    D = query.shape[-1]
    scores = jnp.einsum("bqd,bkd->bqk", query.astype(jnp.float32),
                        key.astype(jnp.float32),
                        precision=lax.Precision.HIGHEST) / math.sqrt(D)
    attn = jax.nn.softmax(scores, axis=-1)
    ctx = jnp.einsum("bqk,bkd->bqd", attn, value.astype(jnp.float32),
                     precision=lax.Precision.HIGHEST)
    keep = bits >= jnp.uint32(keep_threshold)
    ctx = jnp.where(keep, ctx * keep_scale, 0.0)
    x = query.astype(jnp.float32) + ctx
    mean = jnp.mean(x, axis=-1, keepdims=True)
    xc = x - mean
    var = jnp.mean(xc * xc, axis=-1, keepdims=True)
    y = xc * lax.rsqrt(var + LN_EPS) * gamma + beta
    return y, attn


if __name__ == "__main__":
    B, S, D = 2, 8, 32

    root = jax.random.PRNGKey(0)
    kq, kk, kv, kdrop = jax.random.split(root, 4)
    query = jax.random.normal(kq, (B, S, D), dtype=jnp.float32)
    key = jax.random.normal(kk, (B, S, D), dtype=jnp.float32)
    value = jax.random.normal(kv, (B, S, D), dtype=jnp.float32)

    # nn.LayerNorm default init: weight = ones, bias = zeros
    gamma = jnp.ones((D,), dtype=jnp.float32)
    beta = jnp.zeros((D,), dtype=jnp.float32)

    out, attn = residual1_forward(query, key, value, gamma, beta, rng_key=kdrop)
    jax.block_until_ready((out, attn))

    assert out.shape == (B, S, D) and attn.shape == (B, S, S)

    # Validate against a pure-JAX reference using the same dropout bits.
    bits = jax.random.bits(kdrop, (B, S, D), dtype=jnp.uint32)
    thr = int(round(DROPOUT_P * 2.0**32))
    ref_out, ref_attn = _reference(query, key, value, gamma, beta, bits,
                                   thr, 1.0 / (1.0 - DROPOUT_P))
    assert bool(jnp.all(jnp.isfinite(out)))
    assert bool(jnp.allclose(attn, ref_attn, atol=1e-2, rtol=1e-2))
    assert bool(jnp.allclose(out, ref_out, atol=1e-2, rtol=1e-2))

    print("KERNEL_OK")
</pallas_src>

<mosaic_0001>
module attributes {stable_mosaic.version = 11 : i64} {
  func.func @_residual1_kernel(%arg0: i32, %arg1: memref<2x8x32xf32, #tpu.memory_space<vmem>>, %arg2: memref<2x8x32xf32, #tpu.memory_space<vmem>>, %arg3: memref<2x8x32xf32, #tpu.memory_space<vmem>>, %arg4: memref<2x8x32xi32, #tpu.memory_space<vmem>>, %arg5: memref<1x32xf32, #tpu.memory_space<vmem>>, %arg6: memref<1x32xf32, #tpu.memory_space<vmem>>, %arg7: memref<2x8x32xf32, #tpu.memory_space<vmem>>, %arg8: memref<2x8x8xf32, #tpu.memory_space<vmem>>) attributes {dimension_semantics = [#tpu.dimension_semantics<parallel>], iteration_bounds = array<i64: 1>, scalar_prefetch = 0 : i64, scratch_operands = 0 : i64, tpu.core_type = #tpu.core_type<tc>, window_params = [{transform_indices = @transform_0, window_bounds = array<i64: 2, 8, 32>}, {transform_indices = @transform_1, window_bounds = array<i64: 2, 8, 32>}, {transform_indices = @transform_2, window_bounds = array<i64: 2, 8, 32>}, {transform_indices = @transform_3, window_bounds = array<i64: 2, 8, 32>}, {pipeline_mode = #tpu.pipeline_mode<synchronous>, transform_indices = @transform_4, window_bounds = array<i64: 1, 32>}, {pipeline_mode = #tpu.pipeline_mode<synchronous>, transform_indices = @transform_5, window_bounds = array<i64: 1, 32>}, {transform_indices = @transform_6, window_bounds = array<i64: 2, 8, 32>}, {transform_indices = @transform_7, window_bounds = array<i64: 2, 8, 8>}]} {
    %c0 = arith.constant 0 : index
    %c0_0 = arith.constant 0 : index
    %c0_1 = arith.constant 0 : index
    %0 = vector.load %arg1[%c0, %c0_0, %c0_1] : memref<2x8x32xf32, #tpu.memory_space<vmem>>, vector<2x8x32xf32>
    %c0_2 = arith.constant 0 : index
    %c0_3 = arith.constant 0 : index
    %c0_4 = arith.constant 0 : index
    %1 = vector.load %arg2[%c0_2, %c0_3, %c0_4] : memref<2x8x32xf32, #tpu.memory_space<vmem>>, vector<2x8x32xf32>
    %c0_5 = arith.constant 0 : index
    %c0_6 = arith.constant 0 : index
    %c0_7 = arith.constant 0 : index
    %2 = vector.load %arg3[%c0_5, %c0_6, %c0_7] : memref<2x8x32xf32, #tpu.memory_space<vmem>>, vector<2x8x32xf32>
    %cst = arith.constant dense<0.000000e+00> : vector<2x8x8xf32>
    %3 = tpu.matmul %0, %1, %cst {dimension_numbers = #tpu.dot_dimension_numbers<[2], [2], [1], [1], [0, 0, 0, 1, 1, 1], [0], [0]>} : vector<2x8x32xf32>, vector<2x8x32xf32>, vector<2x8x8xf32> -> vector<2x8x8xf32>
    %cst_8 = arith.constant 0.176776692 : f32
    %4 = vector.broadcast %cst_8 : f32 to vector<2x8x8xf32>
    %5 = arith.mulf %3, %4 : vector<2x8x8xf32>
    %cst_9 = arith.constant dense<0xFF800000> : vector<2x8xf32>
    %6 = vector.multi_reduction <maximumf>, %5, %cst_9 [2] : vector<2x8x8xf32> to vector<2x8xf32>
    %7 = vector.shape_cast %6 : vector<2x8xf32> to vector<2x8x1xf32>
    %8 = vector.broadcast %7 : vector<2x8x1xf32> to vector<2x8x8xf32>
    %9 = arith.subf %5, %8 : vector<2x8x8xf32>
    %10 = math.exp %9 : vector<2x8x8xf32>
    %cst_10 = arith.constant dense<0.000000e+00> : vector<2x8xf32>
    %11 = vector.multi_reduction <add>, %10, %cst_10 [2] : vector<2x8x8xf32> to vector<2x8xf32>
    %12 = vector.shape_cast %11 : vector<2x8xf32> to vector<2x8x1xf32>
    %13 = tpu.reciprocal %12 : vector<2x8x1xf32> -> vector<2x8x1xf32>
    %14 = vector.broadcast %13 : vector<2x8x1xf32> to vector<2x8x8xf32>
    %15 = arith.mulf %10, %14 : vector<2x8x8xf32>
    %cst_11 = arith.constant dense<0.000000e+00> : vector<2x8x32xf32>
    %16 = tpu.matmul %15, %2, %cst_11 {dimension_numbers = #tpu.dot_dimension_numbers<[2], [1], [1], [2], [0, 0, 0, 1, 1, 2], [0], [0]>} : vector<2x8x8xf32>, vector<2x8x32xf32>, vector<2x8x32xf32> -> vector<2x8x32xf32>
    %c0_12 = arith.constant 0 : index
    %c0_13 = arith.constant 0 : index
    %c0_14 = arith.constant 0 : index
    %17 = vector.load %arg4[%c0_12, %c0_13, %c0_14] : memref<2x8x32xi32, #tpu.memory_space<vmem>>, vector<2x8x32xi32>
    %c429496730_i32 = arith.constant 429496730 : i32
    %18 = vector.broadcast %c429496730_i32 : i32 to vector<2x8x32xi32>
    %19 = arith.cmpi uge, %17, %18 : vector<2x8x32xi32>
    %cst_15 = arith.constant 1.11111116 : f32
    %20 = vector.broadcast %cst_15 : f32 to vector<2x8x32xf32>
    %21 = arith.mulf %16, %20 : vector<2x8x32xf32>
    %cst_16 = arith.constant 0.000000e+00 : f32
    %22 = vector.broadcast %cst_16 : f32 to vector<2x8x32xf32>
    %23 = arith.select %19, %21, %22 : vector<2x8x32xi1>, vector<2x8x32xf32>
    %24 = arith.addf %0, %23 : vector<2x8x32xf32>
    %cst_17 = arith.constant dense<0.000000e+00> : vector<2x8xf32>
    %25 = vector.multi_reduction <add>, %24, %cst_17 [2] : vector<2x8x32xf32> to vector<2x8xf32>
    %26 = vector.shape_cast %25 : vector<2x8xf32> to vector<2x8x1xf32>
    %cst_18 = arith.constant 3.200000e+01 : f32
    %27 = vector.broadcast %cst_18 : f32 to vector<2x8x1xf32>
    %28 = arith.divf %26, %27 : vector<2x8x1xf32>
    %29 = vector.broadcast %28 : vector<2x8x1xf32> to vector<2x8x32xf32>
    %30 = arith.subf %24, %29 : vector<2x8x32xf32>
    %31 = arith.mulf %30, %30 : vector<2x8x32xf32>
    %cst_19 = arith.constant dense<0.000000e+00> : vector<2x8xf32>
    %32 = vector.multi_reduction <add>, %31, %cst_19 [2] : vector<2x8x32xf32> to vector<2x8xf32>
    %33 = vector.shape_cast %32 : vector<2x8xf32> to vector<2x8x1xf32>
    %cst_20 = arith.constant 3.200000e+01 : f32
    %34 = vector.broadcast %cst_20 : f32 to vector<2x8x1xf32>
    %35 = arith.divf %33, %34 : vector<2x8x1xf32>
    %cst_21 = arith.constant 9.99999974E-6 : f32
    %36 = vector.broadcast %cst_21 : f32 to vector<2x8x1xf32>
    %37 = arith.addf %35, %36 : vector<2x8x1xf32>
    %38 = math.rsqrt %37 : vector<2x8x1xf32>
    %39 = vector.broadcast %38 : vector<2x8x1xf32> to vector<2x8x32xf32>
    %40 = arith.mulf %30, %39 : vector<2x8x32xf32>
    %c0_22 = arith.constant 0 : index
    %c0_23 = arith.constant 0 : index
    %41 = vector.load %arg5[%c0_22, %c0_23] : memref<1x32xf32, #tpu.memory_space<vmem>>, vector<1x32xf32>
    %42 = vector.shape_cast %41 : vector<1x32xf32> to vector<1x1x32xf32>
    %43 = vector.broadcast %42 : vector<1x1x32xf32> to vector<2x8x32xf32>
    %44 = arith.mulf %40, %43 : vector<2x8x32xf32>
    %c0_24 = arith.constant 0 : index
    %c0_25 = arith.constant 0 : index
    %45 = vector.load %arg6[%c0_24, %c0_25] : memref<1x32xf32, #tpu.memory_space<vmem>>, vector<1x32xf32>
    %46 = vector.shape_cast %45 : vector<1x32xf32> to vector<1x1x32xf32>
    %47 = vector.broadcast %46 : vector<1x1x32xf32> to vector<2x8x32xf32>
    %48 = arith.addf %44, %47 : vector<2x8x32xf32>
    %c0_26 = arith.constant 0 : index
    %c0_27 = arith.constant 0 : index
    %c0_28 = arith.constant 0 : index
    %49 = vector.load %arg7[%c0_26, %c0_27, %c0_28] : memref<2x8x32xf32, #tpu.memory_space<vmem>>, vector<2x8x32xf32>
    tpu.vector_store %arg7[%c0_26, %c0_27, %c0_28], %48 {strides = array<i32>} : memref<2x8x32xf32, #tpu.memory_space<vmem>>, vector<2x8x32xf32>,
    %c0_29 = arith.constant 0 : index
    %c0_30 = arith.constant 0 : index
    %c0_31 = arith.constant 0 : index
    %50 = vector.load %arg8[%c0_29, %c0_30, %c0_31] : memref<2x8x8xf32, #tpu.memory_space<vmem>>, vector<2x8x8xf32>
    tpu.vector_store %arg8[%c0_29, %c0_30, %c0_31], %15 {strides = array<i32>} : memref<2x8x8xf32, #tpu.memory_space<vmem>>, vector<2x8x8xf32>,
    return
  }
  func.func @transform_0(%arg0: i32) -> (i32, i32, i32) {
    %c0_i32 = arith.constant 0 : i32
    %c0_i32_0 = arith.constant 0 : i32
    %c0_i32_1 = arith.constant 0 : i32
    return %arg0, %c0_i32, %c0_i32_0 : i32, i32, i32
  }
  func.func @transform_1(%arg0: i32) -> (i32, i32, i32) {
    %c0_i32 = arith.constant 0 : i32
    %c0_i32_0 = arith.constant 0 : i32
    %c0_i32_1 = arith.constant 0 : i32
    return %arg0, %c0_i32, %c0_i32_0 : i32, i32, i32
  }
  func.func @transform_2(%arg0: i32) -> (i32, i32, i32) {
    %c0_i32 = arith.constant 0 : i32
    %c0_i32_0 = arith.constant 0 : i32
    %c0_i32_1 = arith.constant 0 : i32
    return %arg0, %c0_i32, %c0_i32_0 : i32, i32, i32
  }
  func.func @transform_3(%arg0: i32) -> (i32, i32, i32) {
    %c0_i32 = arith.constant 0 : i32
    %c0_i32_0 = arith.constant 0 : i32
    %c0_i32_1 = arith.constant 0 : i32
    return %arg0, %c0_i32, %c0_i32_0 : i32, i32, i32
  }
  func.func @transform_4(%arg0: i32) -> (i32, i32) {
    %c0_i32 = arith.constant 0 : i32
    %c0_i32_0 = arith.constant 0 : i32
    %c0_i32_1 = arith.constant 0 : i32
    return %c0_i32, %c0_i32_0 : i32, i32
  }
  func.func @transform_5(%arg0: i32) -> (i32, i32) {
    %c0_i32 = arith.constant 0 : i32
    %c0_i32_0 = arith.constant 0 : i32
    %c0_i32_1 = arith.constant 0 : i32
    return %c0_i32, %c0_i32_0 : i32, i32
  }
  func.func @transform_6(%arg0: i32) -> (i32, i32, i32) {
    %c0_i32 = arith.constant 0 : i32
    %c0_i32_0 = arith.constant 0 : i32
    %c0_i32_1 = arith.constant 0 : i32
    return %arg0, %c0_i32, %c0_i32_0 : i32, i32, i32
  }
  func.func @transform_7(%arg0: i32) -> (i32, i32, i32) {
    %c0_i32 = arith.constant 0 : i32
    %c0_i32_0 = arith.constant 0 : i32
    %c0_i32_1 = arith.constant 0 : i32
    return %arg0, %c0_i32, %c0_i32_0 : i32, i32, i32
  }
}

</mosaic_0001>

<bundles_post_ra>
// kernel: tpu_custom_call.1
= control target key start
LH: loop header
LB: loop body
LE: loop exit
PB: predicated region body
PF: predicated region fallthrough
CT: control target
= control target key end

     0   :  { %13 = vsyncpa [#allocation3], 0  ;;  %s808_s0 = inlined_call_operand.hbm [shape: f32[2,8,32], index: 0, kind: input, shape index: {}]   ;;  %s809_s1 = inlined_call_operand.hbm [shape: f32[2,8,32], index: 1, kind: input, shape index: {}]   ;;  %s810_s2 = inlined_call_operand.hbm [shape: f32[2,8,32], index: 2, kind: input, shape index: {}]   ;;  %s811_s3 = inlined_call_operand.hbm [shape: u32[2,8,32], index: 3, kind: input, shape index: {}]   ;;  %s812_s4 = inlined_call_operand.vmem [shape: f32[1,32], index: 4, kind: input, shape index: {}]   ;;  %s813_s5 = inlined_call_operand.vmem [shape: f32[1,32], index: 5, kind: input, shape index: {}]   ;;  %s814_s6 = inlined_call_operand.hbm [shape: f32[2,8,32], index: 6, kind: output, shape index: {0}]   ;;  %s815_s7 = inlined_call_operand.hbm [shape: f32[2,8,8], index: 7, kind: output, shape index: {1}]  }
   0x1   :  { %14 = vsyncpa [#allocation6], 0 }
   0x2   :  { %15 = vsyncpa [#allocation9], 0 }
   0x3   :  { %16 = vsyncpa [#allocation4], 0 }
   0x4   :  { %17 = vsyncpa [#allocation12], 0  ;;  %s694_s24 = smov [#allocation5]   ;;  %s695_s26 = smov [#allocation2]  }
   0x5   :  { %s35_s25 = sshll.u32 %s694_s24, 4  ;;  %s23_s27 = sshll.u32 %s695_s26, 4  ;;  %s36_s25 = int_to_ptr.vmem [resolvable:$true] %s35_s25  ;;  %s24_s27 = int_to_ptr.vmem [resolvable:$true] %s23_s27 }
   0x6   :  { %s572_s28 = scalar_lea.vmem %s36_s25, 256  ;;  %p577_p1 = scmp.lt.s32.totalorder %s36_s25, %s36_s25 }
   0x7   :  { %p573_p0 = scmp.ne.s32.totalorder %s36_s25, %s572_s28  ;;  %p578_p2 = scmp.lt.s32.totalorder %s572_s28, %s572_s28 }
   0x9   :  { %p579_p3 = por %p578_p2, %p577_p1 }
   0xb   :  { %p580_p4 = pnand %p579_p3, %p573_p0 }
   0xd   :  { %583 = shalt.err (!%p580_p4)
}
   0xe   :  { %s696_s29 = smov 128   ;;  %s697_s30 = smov 8  }
   0xf   :  { %41 = dma.hbm_to_vmem [thread:$0]  %s809_s1, 256, %s36_s25, [#allocation6], %s696_s29, %s696_s29, %s697_s30  }
  0x10   :  { %s592_s10 = scalar_lea.vmem %s24_s27, 256  ;;  %p597_p6 = scmp.lt.s32.totalorder %s24_s27, %s24_s27 }
  0x11   :  { %p593_p5 = scmp.ne.s32.totalorder %s24_s27, %s592_s10  ;;  %p598_p7 = scmp.lt.s32.totalorder %s592_s10, %s592_s10 }
  0x13   :  { %p599_p8 = por %p598_p7, %p597_p6 }
  0x15   :  { %p600_p9 = pnand %p599_p8, %p593_p5 }
  0x17   :  { %603 = shalt.err (!%p600_p9)
}
  0x18   :  { %29 = dma.hbm_to_vmem [thread:$0]  %s808_s0, 256, %s24_s27, [#allocation3], %s696_s29, %s696_s29, %s697_s30  }
  0x19   :  { %s698_s13 = smov [#allocation7]   ;;  %s699_s15 = smov [#allocation8]  }
  0x1a   :  { %s47_s14 = sshll.u32 %s698_s13, 4  ;;  %s59_s16 = sshll.u32 %s699_s15, 4  ;;  %s48_s14 = int_to_ptr.vmem [resolvable:$true] %s47_s14  ;;  %s60_s16 = int_to_ptr.vmem [resolvable:$true] %s59_s16 }
  0x1b   :  { %s612_s1 = scalar_lea.vmem %s48_s14, 256  ;;  %p617_p11 = scmp.lt.s32.totalorder %s48_s14, %s48_s14 }
  0x1c   :  { %p613_p10 = scmp.ne.s32.totalorder %s48_s14, %s612_s1  ;;  %p618_p12 = scmp.lt.s32.totalorder %s612_s1, %s612_s1 }
  0x1e   :  { %p619_p13 = por %p618_p12, %p617_p11 }
  0x20   :  { %p620_p0 = pnand %p619_p13, %p613_p10 }
  0x22   :  { %623 = shalt.err (!%p620_p0)
}
  0x23   :  { %53 = dma.hbm_to_vmem [thread:$0]  %s810_s2, 256, %s48_s14, [#allocation6], %s696_s29, %s696_s29, %s697_s30  }
  0x24   :  { %s632_s0 = scalar_lea.vmem %s60_s16, 256  ;;  %p637_p2 = scmp.lt.s32.totalorder %s60_s16, %s60_s16 }
  0x25   :  { %p633_p1 = scmp.ne.s32.totalorder %s60_s16, %s632_s0  ;;  %p638_p3 = scmp.lt.s32.totalorder %s632_s0, %s632_s0 }
  0x27   :  { %p639_p4 = por %p638_p3, %p637_p2 }
  0x29   :  { %p640_p5 = pnand %p639_p4, %p633_p1 }
  0x2b   :  { %643 = shalt.err (!%p640_p5)
}
  0x2c   :  { %65 = dma.hbm_to_vmem [thread:$0]  %s811_s3, 256, %s60_s16, [#allocation9], %s696_s29, %s696_s29, %s697_s30  }
  0x2d   :  { %684 = dma.done.wait [#allocation3], 256  }
  0x2e   :  { %685 = vsyncadd [#allocation3], 4294967040 }
  0x2f   :  { %686 = dma.done.wait [#allocation6], 512  }
  0x30   :  { %687 = vsyncadd [#allocation6], 4294966784 }
  0x31   :  { %688 = dma.done.wait [#allocation9], 256  }
  0x32   :  { %689 = vsyncadd [#allocation9], 4294967040  ;;  %v700_v0 = vmov 0.0   ;;  %vm701_vm0 = vmmov 0   ;;  %vm88_vm1 = vcmask 261120   ;;  %v84_v1 = vld [vmem:[#allocation5] sm:$0xff] }
  0x33   :  { %522 = vmatprep.subr.mxu0 %v700_v0  ;;  %527 = vmatprep.subr.mxu1 %v700_v0  ;;  %v85_v2 = vld [vmem:[#allocation5 + $0x8] sm:$0xff]  ;;  %v82_v3 = vld [vmem:[#allocation2] sm:$0xff]  ;;  %v770_v4 = vld [vmem:[#allocation2 + $0x8] sm:$0xff]  ;;  %vm243_vm2 = vcmask 64512   ;;  %s702_s2 = smov [#allocation11]  }
  0x34   :  { %524 = vmatprep.mubr.msk.f32.mxu0 %vm701_vm0, %v700_v0  ;;  %529 = vmatprep.mubr.msk.f32.mxu1 %vm701_vm0, %v700_v0  ;;  %v86_v23 = vld [vmem:[#allocation7] sm:$0xff]  ;;  %v87_v24 = vld [vmem:[#allocation7 + $0x8] sm:$0xff]  ;;  %v412_v31 = vld [vmem:[#allocation8] sm:$0xff]  ;;  %s488_s3 = sshll.u32 %s702_s2, 4  ;;  %s489_s3 = int_to_ptr.vmem [resolvable:$true] %s488_s3 }
  0x35   :  { %523 = vmatpush3.xpose.msk.msra.mxu0 %vm88_vm1, %v84_v1  ;;  %528 = vmatpush3.xpose.msk.msra.mxu1 %vm88_vm1, %v85_v2  ;;  %vm414_vm3 = vcmp.ge.u32.totalorder %v412_v31, 429496730  ;;  %v413_v34 = vld [vmem:[#allocation8 + $0x8] sm:$0xff]  ;;  %s644_s21 = scalar_lea.vmem %s489_s3, 256  ;;  %p649_p7 = scmp.lt.s32.totalorder %s489_s3, %s489_s3 }
  0x36   :  { %532 = vmatprep.subr.mxu0 %v700_v0  ;;  %537 = vmatprep.subr.mxu1 %v700_v0  ;;  %vm415_vm4 = vcmp.ge.u32.totalorder %v413_v34, 429496730  ;;  %p645_p6 = scmp.ne.s32.totalorder %s489_s3, %s644_s21  ;;  %p650_p8 = scmp.lt.s32.totalorder %s644_s21, %s644_s21 }
  0x38   :  { %525 = vmatmul.mubr.msk.f32.vlgmr.msra.gmra.mxu0 %vm88_vm1, %v82_v3  ;;  %530 = vmatmul.mubr.msk.f32.vlgmr.msra.gmra.mxu1 %vm88_vm1, %v770_v4  ;;  %p651_p9 = por %p650_p8, %p649_p7 }
  0x39   :  { %534 = vmatprep.mubr.msk.f32.mxu0 %vm701_vm0, %v700_v0  ;;  %539 = vmatprep.mubr.msk.f32.mxu1 %vm701_vm0, %v700_v0 }
  0x3a   :  { %533 = vmatpush3.msra.mxu0 %v86_v23  ;;  %538 = vmatpush3.msra.mxu1 %v87_v24  ;;  %p652_p10 = pnand %p651_p9, %p645_p6 }
  0xf8   :  { %v161_v5 = vpop.f32.mrf.mxu0  ;;  %v237_v6 = vpop.f32.mrf.mxu1 }
  0xf9   :  { %v241_v7 = vmul.f32 0.17677669, %v161_v5  ;;  %v242_v8 = vmul.f32 0.17677669, %v237_v6 }
  0xfa   :  { %v526_v9 = vpop.f32.mrf.mxu0  ;;  %v531_v10 = vpop.f32.mrf.mxu1 }
  0xfb   :  { %v244_v11 = vsel %vm243_vm2, %v241_v7, -inf  ;;  %v247_v12 = vsel %vm243_vm2, %v242_v8, -inf }
  0xfc   :  { %245 = vmax.xlane.f32.xlu0 %v244_v11 }
 0x100   :  { %248 = vmax.xlane.f32.xlu0 %v247_v12 }
 0x185   :  { %v246_v13 = vpop.xlane.xlu0 %245 }
 0x186   :  { %v250_v14 = vsub.f32 %v241_v7, %v246_v13 }
 0x188   :  { %v252_v15 = vmul.f32 1.442695, %v250_v14 }
 0x189   :  { %v249_v16 = vpop.xlane.xlu0 %248 }
 0x18a   :  { %552 = vpow2.f32 %v252_v15  ;;  %v251_v17 = vsub.f32 %v242_v8, %v249_v16 }
 0x18c   :  { %v254_v18 = vmul.f32 1.442695, %v251_v17 }
 0x18e   :  { %554 = vpow2.f32 %v254_v18 }
 0x197   :  { %v553_v19 = vpop.eup %552 }
 0x198   :  { %v256_v20 = vsel %vm243_vm2, %v553_v19, 0.0 }
 0x199   :  { %257 = vadd.xlane.f32.xlu1 %v256_v20 }
 0x19b   :  { %v555_v21 = vpop.eup %554 }
 0x19c   :  { %v259_v22 = vsel %vm243_vm2, %v555_v21, 0.0 }
 0x19d   :  { %260 = vadd.xlane.f32.xlu1 %v259_v22 }
 0x222   :  { %v258_v25 = vpop.xlane.xlu1 %257 }
 0x223   :  { %556 = vrcp.f32 %v258_v25 }
 0x226   :  { %v261_v26 = vpop.xlane.xlu1 %260 }
 0x227   :  { %558 = vrcp.f32 %v261_v26 }
 0x230   :  { %v557_v27 = vpop.eup %556 }
 0x231   :  { %v264_v28 = vmul.f32 %v557_v27, %v553_v19 }
 0x233   :  { %535 = vmatmul.mubr.msk.f32.vlgmr.msra.gmra.mxu0 %vm243_vm2, %v264_v28  ;;  %469 = vst.msk [vmem:[#allocation11] sm:$0xff] %vm243_vm2, %v264_v28 }
 0x234   :  { %v559_v29 = vpop.eup %558 }
 0x235   :  { %v265_v30 = vmul.f32 %v559_v29, %v555_v21 }
 0x237   :  { %540 = vmatmul.mubr.msk.f32.vlgmr.msra.gmra.mxu1 %vm243_vm2, %v265_v30  ;;  %470 = vst.msk [vmem:[#allocation11 + $0x8] sm:$0xff] %vm243_vm2, %v265_v30 }
 0x2f3   :  { %v335_v32 = vpop.f32.mrf.mxu0 }
 0x2f4   :  { %v416_v33 = vmul.f32 1.1111112, %v335_v32 }
 0x2f5   :  { %v536_v35 = vpop.f32.mrf.mxu0 }
 0x2f6   :  { %v418_v36 = vsel %vm414_vm3, %v416_v33, 0.0 }
 0x2f7   :  { %v408_v37 = vpop.f32.mrf.mxu1  ;;  %v420_v38 = vadd.f32 %v418_v36, %v82_v3 }
 0x2f8   :  { %v417_v39 = vmul.f32 1.1111112, %v408_v37 }
 0x2f9   :  { %v541_v40 = vpop.f32.mrf.mxu1  ;;  %v422_v41 = vsel %vm88_vm1, %v420_v38, 0.0 }
 0x2fa   :  { %v419_v42 = vsel %vm415_vm4, %v417_v39, 0.0  ;;  %423 = vadd.xlane.f32.xlu0 %v422_v41 }
 0x2fb   :  { %v421_v43 = vadd.f32 %v419_v42, %v770_v4 }
 0x2fd   :  { %v425_v44 = vsel %vm88_vm1, %v421_v43, 0.0 }
 0x2fe   :  { %426 = vadd.xlane.f32.xlu1 %v425_v44 }
 0x383   :  { %v424_v45 = vpop.xlane.xlu0 %423 }
 0x384   :  { %v429_v46 = vmul.f32 0.03125, %v424_v45 }
 0x386   :  { %v431_v47 = vsub.f32 %v420_v38, %v429_v46 }
 0x387   :  { %v427_v48 = vpop.xlane.xlu1 %426 }
 0x388   :  { %v430_v49 = vmul.f32 0.03125, %v427_v48  ;;  %v433_v50 = vmul.f32 %v431_v47, %v431_v47 }
 0x38a   :  { %v432_v51 = vsub.f32 %v421_v43, %v430_v49  ;;  %v435_v52 = vsel %vm88_vm1, %v433_v50, 0.0 }
 0x38b   :  { %436 = vadd.xlane.f32.xlu0 %v435_v52 }
 0x38c   :  { %v434_v53 = vmul.f32 %v432_v51, %v432_v51 }
 0x38e   :  { %v438_v54 = vsel %vm88_vm1, %v434_v53, 0.0 }
 0x38f   :  { %439 = vadd.xlane.f32.xlu1 %v438_v54 }
 0x390   :  { %655 = shalt.err (!%p652_p10)
}
 0x391   :  { %494 = dma.vmem_to_hbm [thread:$0]  %s489_s3, 256, %s815_s7, [#allocation12], %s696_s29, %s696_s29, %s697_s30  }
 0x392   :  { %v512_v62 = vld [vmem:[%s812_s4] ss:$0 sm:$0xff]  ;;  %s703_s7 = smov [#allocation10]  }
 0x393   :  { %v513_v0 = vld [vmem:[%s813_s5] ss:$0 sm:$0xff]  ;;  %s476_s28 = sshll.u32 %s703_s7, 4  ;;  %s477_s28 = int_to_ptr.vmem [resolvable:$true] %s476_s28 }
 0x394   :  { %s664_s8 = scalar_lea.vmem %s477_s28, 256  ;;  %p669_p12 = scmp.lt.s32.totalorder %s477_s28, %s477_s28 }
 0x395   :  { %p665_p11 = scmp.ne.s32.totalorder %s477_s28, %s664_s8  ;;  %p670_p13 = scmp.lt.s32.totalorder %s664_s8, %s664_s8 }
 0x397   :  { %p671_p0 = por %p670_p13, %p669_p12 }
 0x399   :  { %p672_p1 = pnand %p671_p0, %p665_p11 }
 0x414   :  { %v437_v55 = vpop.xlane.xlu0 %436 }
 0x415   :  { %v441_v56 = vmul.f32 0.03125, %v437_v55 }
 0x417   :  { %v443_v57 = vadd.f32 1e-05, %v441_v56 }
 0x418   :  { %v440_v58 = vpop.xlane.xlu1 %439 }
 0x419   :  { %560 = vrsqrt.f32 %v443_v57  ;;  %v442_v59 = vmul.f32 0.03125, %v440_v58 }
 0x41b   :  { %v444_v60 = vadd.f32 1e-05, %v442_v59 }
 0x41d   :  { %562 = vrsqrt.f32 %v444_v60 }
 0x426   :  { %v561_v61 = vpop.eup %560 }
 0x427   :  { %v447_v63 = vmul.f32 %v561_v61, %v431_v47 }
 0x429   :  { %v456_v1 = vmul.f32 %v512_v62, %v447_v63 }
 0x42a   :  { %v563_v2 = vpop.eup %562 }
 0x42b   :  { %v448_v3 = vmul.f32 %v563_v2, %v432_v51  ;;  %v465_v4 = vadd.f32 %v513_v0, %v456_v1 }
 0x42d   :  { %v457_v5 = vmul.f32 %v512_v62, %v448_v3  ;;  %467 = vst.msk [vmem:[#allocation10] sm:$0xff] %vm88_vm1, %v465_v4 }
 0x42f   :  { %v466_v6 = vadd.f32 %v513_v0, %v457_v5 }
 0x431   :  { %468 = vst.msk [vmem:[#allocation10 + $0x8] sm:$0xff] %vm88_vm1, %v466_v6 }
 0x432   :  { %675 = shalt.err (!%p672_p1)
}
 0x433   :  { %482 = dma.vmem_to_hbm [thread:$0]  %s477_s28, 256, %s814_s6, [#allocation4], %s696_s29, %s696_s29, %s697_s30  }
 0x434   :  { %690 = dma.done.wait [#allocation4], 256  }
 0x435   :  { %691 = vsyncadd [#allocation4], 4294967040 }
 0x436   :  { %692 = dma.done.wait [#allocation12], 256  }
 0x437   :  { %693 = vsyncadd [#allocation12], 4294967040 }
 0x438   :  { %501 = vsyncpa [#allocation3], 1 }
 0x439   :  { %502 = vsyncpa [#allocation6], 1 }
 0x43a   :  { %503 = vsyncpa [#allocation9], 1 }
 0x43b   :  { %504 = vsyncpa [#allocation4], 1 }
 0x43c   :  { %505 = vsyncpa [#allocation12], 1 }

</bundles_post_ra>
